<compile_context>
chip_gen: v6e
topology: v6e:2x2x1
jax: 0.10.0
libtpu: 0.0.40
codegen_flags: <defaults>
</compile_context>

<pallas_src>
import jax
import jax.numpy as jnp
from jax.experimental import pallas as pl
from jax.experimental.pallas import tpu as pltpu

NEG_SLOPE = 0.01   # nn.LeakyReLU default
BN_EPS = 1e-5
HOFF = 128         # lane offset of the h tile inside the padded scratch (keeps its store aligned)


def _leaky(v):
    # max(v, 0.01*v): 1 mul + 1 max instead of compare + select
    return jnp.maximum(v, NEG_SLOPE * v)


def _conv1(w1, b1, x):
    # ConvBNReLU #1 (1x1 conv, BN folded): lane-dense (C2,C)@(C,Lw) on the MXU.
    h = jnp.dot(w1, x.astype(jnp.bfloat16), preferred_element_type=jnp.float32)
    return _leaky(h + b1)


def _conv2_from_hext(w2_ref, b2_ref, hext_ref, l_t):
    # ConvBNReLU #2 (k=5, pad=2, BN folded): five shifted (C,C2)@(C2,L_T) matmuls
    # accumulated in f32, reading bf16 directly from the scratch (no concatenate,
    # no per-read casts).
    c2 = hext_ref.shape[0]
    y = jnp.dot(w2_ref[:, 0:c2], hext_ref[:, pl.ds(HOFF - 2, l_t)],
                preferred_element_type=jnp.float32)
    for k in range(1, 5):
        y += jnp.dot(w2_ref[:, k * c2:(k + 1) * c2],
                     hext_ref[:, pl.ds(HOFF - 2 + k, l_t)],
                     preferred_element_type=jnp.float32)
    return _leaky(y + b2_ref[...])


def resblock_kernel_single(x_ref, w1_ref, b1_ref, w2_ref, b2_ref, o_ref, hext_ref):
    # Whole sequence in one tile: no halos, no neighbour windows.
    x = x_ref[0]                                        # (C, L_T) f32
    _, l_t = x.shape
    c2 = hext_ref.shape[0]

    h = _conv1(w1_ref[...], b1_ref[...], x)             # (C2, L_T) f32
    hext_ref[:, pl.ds(HOFF, l_t)] = h.astype(hext_ref.dtype)   # lane-aligned store, bf16
    # conv2 'same' padding: h is zero outside the sequence
    hext_ref[:, pl.ds(HOFF - 2, 2)] = jnp.zeros((c2, 2), hext_ref.dtype)
    hext_ref[:, pl.ds(HOFF + l_t, 2)] = jnp.zeros((c2, 2), hext_ref.dtype)

    y = _conv2_from_hext(w2_ref, b2_ref, hext_ref, l_t)
    o_ref[0] = (y + x).astype(o_ref.dtype)              # residual add, unmasked store


def resblock_kernel_multi(x_ref, xl_ref, xr_ref, w1_ref, b1_ref, w2_ref, b2_ref,
                          o_ref, hext_ref):
    # x_ref   : (1, C, L_T)        f32   current tile (L in lanes)
    # xl_ref  : (1, C, 128)        f32   last 128 cols of the left-neighbour tile (clamped)
    # xr_ref  : (1, C, 128)        f32   first 128 cols of the right-neighbour tile (clamped)
    # hext_ref: (C2, L_T+256)      bf16  scratch holding [left-halo | h | right-halo]
    t = pl.program_id(1)
    nt = pl.num_programs(1)

    x = x_ref[0]
    _, l_t = x.shape
    c2 = hext_ref.shape[0]
    w1 = w1_ref[...]
    b1 = b1_ref[...]

    h = _conv1(w1, b1, x)                               # (C2, L_T) f32
    hext_ref[:, pl.ds(HOFF, l_t)] = h.astype(hext_ref.dtype)

    # ---- halo columns of h, recomputed from the neighbour x windows, gated by pl.when ----
    @pl.when(t == 0)
    def _():
        hext_ref[:, pl.ds(HOFF - 2, 2)] = jnp.zeros((c2, 2), hext_ref.dtype)

    @pl.when(t > 0)
    def _():
        hl = _conv1(w1, b1, xl_ref[0])[:, 126:128]      # h at global cols t*L_T-2 .. t*L_T-1
        hext_ref[:, pl.ds(HOFF - 2, 2)] = hl.astype(hext_ref.dtype)

    @pl.when(t == nt - 1)
    def _():
        hext_ref[:, pl.ds(HOFF + l_t, 2)] = jnp.zeros((c2, 2), hext_ref.dtype)

    @pl.when(t < nt - 1)
    def _():
        hr = _conv1(w1, b1, xr_ref[0])[:, 0:2]          # h at global cols (t+1)*L_T .. +1
        hext_ref[:, pl.ds(HOFF + l_t, 2)] = hr.astype(hext_ref.dtype)

    y = _conv2_from_hext(w2_ref, b2_ref, hext_ref, l_t)
    o_ref[0] = (y + x).astype(o_ref.dtype)


def _pick_l_tile(L, max_tile=16384):
    # Largest tile <= max_tile that divides L and is a multiple of 128.  128-multiples keep
    # stores unmasked; the large cap amortizes the ~0.35us per-grid-step overhead (at C~16
    # a 1024-col tile is only ~128 KiB of HBM traffic) while the footprint stays well
    # inside every generation's VMEM (limit set explicitly below).
    t = min(L, max_tile)
    while t % 128 or L % t:
        t -= 128
    assert t >= 128
    return t


def resblock_pallas(x, w1, b1, w2, b2, *, l_tile=None, max_tile=16384):
    """x: (N, C, L) f32 in PyTorch NCL layout.  w1: (C2, C) bf16, b1: (C2, 1) f32,
    w2: (C, 5*C2) bf16 (tap-major), b2: (C, 1) f32 — BatchNorm already folded (eval mode)."""
    N, C, L = x.shape
    C2 = w1.shape[0]
    assert L % 128 == 0, "L must be a multiple of 128"  # TODO(synk): pad ragged lengths
    if l_tile is None:
        l_tile = _pick_l_tile(L, max_tile)
    assert l_tile % 128 == 0 and L % l_tile == 0
    T = L // l_tile
    r = l_tile // 128          # 128-col blocks per tile
    nb = L // 128              # 128-col blocks per sequence

    def weight_specs(idx):
        # constant index_map -> fetched once, VMEM-resident
        return [pl.BlockSpec((C2, C), idx),
                pl.BlockSpec((C2, 1), idx),
                pl.BlockSpec((C, 5 * C2), idx),
                pl.BlockSpec((C, 1), idx)]

    scratch = [pltpu.VMEM((C2, l_tile + 256), jnp.bfloat16)]
    out_shape = jax.ShapeDtypeStruct((N, C, L), x.dtype)

    # Footprint estimate -> explicit scoped-VMEM limit (>= 32 MiB so larger tiles work on
    # v5e's 16 MiB default, <= 48 MiB to stay inside v7x's 64 MiB physical VMEM).
    est = (4 * C * l_tile * 4            # x tile + out tile, double-buffered, f32
           + 8 * C * 128 * 4             # xl/xr halo windows, double-buffered
           + C2 * (l_tile + 256) * 2     # bf16 hext scratch
           + 4 * C * l_tile * 4          # in-kernel f32 temporaries (x, h, y) headroom
           + (2 << 20))
    vmem_limit = int(min(max(32 << 20, 2 * est), 48 << 20))

    if T == 1:
        # Fast path: whole sequence in one tile -> no halo work, no neighbour inputs.
        return pl.pallas_call(
            resblock_kernel_single,
            out_shape=out_shape,
            grid_spec=pltpu.PrefetchScalarGridSpec(
                num_scalar_prefetch=0,
                grid=(N,),
                in_specs=[pl.BlockSpec((1, C, l_tile), lambda b: (b, 0, 0))]
                         + weight_specs(lambda b: (0, 0)),
                out_specs=pl.BlockSpec((1, C, l_tile), lambda b: (b, 0, 0)),
                scratch_shapes=scratch),
            compiler_params=pltpu.CompilerParams(
                dimension_semantics=("parallel",),
                vmem_limit_bytes=vmem_limit),
        )(x, w1, b1, w2, b2)

    # Multi-tile path: halos recomputed from clamped, auto-pipelined 128-wide neighbour
    # windows of x (tiles stay independent -> both grid axes 'parallel' for v7x megacore).
    return pl.pallas_call(
        resblock_kernel_multi,
        out_shape=out_shape,
        grid_spec=pltpu.PrefetchScalarGridSpec(
            num_scalar_prefetch=0,
            grid=(N, T),
            in_specs=[
                pl.BlockSpec((1, C, l_tile), lambda b, t: (b, 0, t)),
                pl.BlockSpec((1, C, 128),
                             lambda b, t: (b, 0, jnp.maximum(t * r - 1, 0))),
                pl.BlockSpec((1, C, 128),
                             lambda b, t: (b, 0, jnp.minimum((t + 1) * r, nb - 1))),
            ] + weight_specs(lambda b, t: (0, 0)),
            out_specs=pl.BlockSpec((1, C, l_tile), lambda b, t: (b, 0, t)),
            scratch_shapes=scratch),
        compiler_params=pltpu.CompilerParams(
            dimension_semantics=("parallel", "parallel"),
            vmem_limit_bytes=vmem_limit),
    )(x, x, x, w1, b1, w2, b2)


# ----------------------------- plain-JAX glue / reference -----------------------------

def fold_conv_bn(w, b, gamma, beta, mean, var):
    """Fold eval-mode BatchNorm1d into a Conv1d weight/bias.
    w: (Cout, Cin, K); b/gamma/beta/mean/var: (Cout,)"""
    scale = gamma / jnp.sqrt(var + BN_EPS)
    return w * scale[:, None, None], (b - mean) * scale + beta


def prepare_params(w1_raw, b1_raw, bn1, w2_raw, b2_raw, bn2):
    g1, be1, m1, v1 = bn1
    g2, be2, m2, v2 = bn2
    C2, C, _ = w1_raw.shape
    w1_f, b1_f = fold_conv_bn(w1_raw, b1_raw, g1, be1, m1, v1)
    w2_f, b2_f = fold_conv_bn(w2_raw, b2_raw, g2, be2, m2, v2)
    w1m = w1_f[:, :, 0].astype(jnp.bfloat16)                               # (C2, C)
    b1m = b1_f.reshape(C2, 1).astype(jnp.float32)                          # (C2, 1)
    # (Cout, Cin, K) -> (Cout, K, Cin) -> (Cout, K*Cin): tap-major, matches the kernel taps
    w2m = jnp.transpose(w2_f, (0, 2, 1)).reshape(C, 5 * C2).astype(jnp.bfloat16)
    b2m = b2_f.reshape(C, 1).astype(jnp.float32)                           # (C, 1)
    return w1m, b1m, w2m, b2m


def reference(x, w1, b1, w2, b2):
    """Pure-JAX NCL reference with the same folded params and the kernel's bf16 MXU operands."""
    N, C, L = x.shape
    C2 = w1.shape[0]
    w1f = w1.astype(jnp.float32)
    w2f = w2.astype(jnp.float32)
    xb = x.astype(jnp.bfloat16).astype(jnp.float32)
    h = _leaky(jnp.einsum('oc,ncl->nol', w1f, xb,
                          preferred_element_type=jnp.float32) + b1[None])
    hb = h.astype(jnp.bfloat16).astype(jnp.float32)
    hp = jnp.pad(hb, ((0, 0), (0, 0), (2, 2)))
    y = sum(jnp.einsum('oc,ncl->nol', w2f[:, k * C2:(k + 1) * C2], hp[:, :, k:k + L],
                       preferred_element_type=jnp.float32)
            for k in range(5))
    y = _leaky(y + b2[None])
    return y + x


if __name__ == "__main__":
    key = jax.random.PRNGKey(0)
    N, C, L = 2, 16, 256          # nin = 16 -> hidden = nin // 2 = 8
    C2 = C // 2

    ks = jax.random.split(key, 13)
    # ConvBNReLU #1 raw params (PyTorch shapes)
    w1_raw = jax.random.normal(ks[0], (C2, C, 1), jnp.float32) * 0.3
    b1_raw = jax.random.normal(ks[1], (C2,), jnp.float32) * 0.1
    bn1 = (1.0 + 0.1 * jax.random.normal(ks[2], (C2,), jnp.float32),
           0.1 * jax.random.normal(ks[3], (C2,), jnp.float32),
           0.1 * jax.random.normal(ks[4], (C2,), jnp.float32),
           0.5 + jnp.abs(jax.random.normal(ks[5], (C2,), jnp.float32)))
    # ConvBNReLU #2 raw params
    w2_raw = jax.random.normal(ks[6], (C, C2, 5), jnp.float32) * 0.2
    b2_raw = jax.random.normal(ks[7], (C,), jnp.float32) * 0.1
    bn2 = (1.0 + 0.1 * jax.random.normal(ks[8], (C,), jnp.float32),
           0.1 * jax.random.normal(ks[9], (C,), jnp.float32),
           0.1 * jax.random.normal(ks[10], (C,), jnp.float32),
           0.5 + jnp.abs(jax.random.normal(ks[11], (C,), jnp.float32)))

    w1m, b1m, w2m, b2m = prepare_params(w1_raw, b1_raw, bn1, w2_raw, b2_raw, bn2)

    # Input in PyTorch NCL layout — this is also the kernel's native layout (L in lanes).
    x = jax.random.normal(ks[12], (N, C, L), jnp.float32)

    ref = reference(x, w1m, b1m, w2m, b2m)

    # 1) default tiling -> single-tile fast path (no halo work, no neighbour inputs)
    out1 = jax.block_until_ready(resblock_pallas(x, w1m, b1m, w2m, b2m))
    # 2) forced l_tile=128 -> multi-tile path, exercises the recompute-halo scheme
    out2 = jax.block_until_ready(resblock_pallas(x, w1m, b1m, w2m, b2m, l_tile=128))

    for out in (out1, out2):
        assert out.shape == ref.shape
        err = float(jnp.max(jnp.abs(out - ref)))
        assert jnp.allclose(out, ref, atol=1e-3, rtol=1e-3), err

    print("KERNEL_OK")
</pallas_src>

<mosaic_0001>
module attributes {stable_mosaic.version = 11 : i64} {
  func.func @resblock_kernel_single(%arg0: i32, %arg1: memref<1x16x256xf32, #tpu.memory_space<vmem>>, %arg2: memref<8x16xbf16, #tpu.memory_space<vmem>>, %arg3: memref<8x1xf32, #tpu.memory_space<vmem>>, %arg4: memref<16x40xbf16, #tpu.memory_space<vmem>>, %arg5: memref<16x1xf32, #tpu.memory_space<vmem>>, %arg6: memref<1x16x256xf32, #tpu.memory_space<vmem>>, %arg7: memref<8x512xbf16, #tpu.memory_space<vmem>>) attributes {dimension_semantics = [#tpu.dimension_semantics<parallel>], iteration_bounds = array<i64: 2>, scalar_prefetch = 0 : i64, scratch_operands = 1 : i64, tpu.core_type = #tpu.core_type<tc>, window_params = [{transform_indices = @transform_0, window_bounds = array<i64: 1, 16, 256>}, {pipeline_mode = #tpu.pipeline_mode<synchronous>, transform_indices = @transform_1, window_bounds = array<i64: 8, 16>}, {pipeline_mode = #tpu.pipeline_mode<synchronous>, transform_indices = @transform_2, window_bounds = array<i64: 8, 1>}, {pipeline_mode = #tpu.pipeline_mode<synchronous>, transform_indices = @transform_3, window_bounds = array<i64: 16, 40>}, {pipeline_mode = #tpu.pipeline_mode<synchronous>, transform_indices = @transform_4, window_bounds = array<i64: 16, 1>}, {transform_indices = @transform_5, window_bounds = array<i64: 1, 16, 256>}]} {
    %c0 = arith.constant 0 : index
    %c0_0 = arith.constant 0 : index
    %c0_1 = arith.constant 0 : index
    %0 = vector.load %arg1[%c0, %c0_0, %c0_1] : memref<1x16x256xf32, #tpu.memory_space<vmem>>, vector<1x16x256xf32>
    %1 = vector.shape_cast %0 : vector<1x16x256xf32> to vector<16x256xf32>
    %c0_2 = arith.constant 0 : index
    %c0_3 = arith.constant 0 : index
    %2 = vector.load %arg2[%c0_2, %c0_3] : memref<8x16xbf16, #tpu.memory_space<vmem>>, vector<8x16xbf16>
    %c0_4 = arith.constant 0 : index
    %c0_5 = arith.constant 0 : index
    %3 = vector.load %arg3[%c0_4, %c0_5] : memref<8x1xf32, #tpu.memory_space<vmem>>, vector<8x1xf32>
    %4 = arith.truncf %1 : vector<16x256xf32> to vector<16x256xbf16>
    %cst = arith.constant dense<0.000000e+00> : vector<8x256xf32>
    %5 = tpu.matmul %2, %4, %cst {dimension_numbers = #tpu.dot_dimension_numbers<[1], [0], [0], [1], [0, 0, 1, 1], [], []>} : vector<8x16xbf16>, vector<16x256xbf16>, vector<8x256xf32> -> vector<8x256xf32>
    %6 = vector.broadcast %3 : vector<8x1xf32> to vector<8x256xf32>
    %7 = arith.addf %5, %6 : vector<8x256xf32>
    %cst_6 = arith.constant 0.00999999977 : f32
    %8 = vector.broadcast %cst_6 : f32 to vector<8x256xf32>
    %9 = arith.mulf %8, %7 : vector<8x256xf32>
    %10 = arith.maximumf %7, %9 : vector<8x256xf32>
    %11 = arith.truncf %10 : vector<8x256xf32> to vector<8x256xbf16>
    %c0_7 = arith.constant 0 : index
    %c128 = arith.constant 128 : index
    %12 = vector.load %arg7[%c0_7, %c128] : memref<8x512xbf16, #tpu.memory_space<vmem>>, vector<8x256xbf16>
    tpu.vector_store %arg7[%c0_7, %c128], %11 {strides = array<i32>} : memref<8x512xbf16, #tpu.memory_space<vmem>>, vector<8x256xbf16>,
    %cst_8 = arith.constant 0.000000e+00 : bf16
    %13 = vector.broadcast %cst_8 : bf16 to vector<8x2xbf16>
    %c0_9 = arith.constant 0 : index
    %c126 = arith.constant 126 : index
    %14 = vector.load %arg7[%c0_9, %c126] : memref<8x512xbf16, #tpu.memory_space<vmem>>, vector<8x2xbf16>
    tpu.vector_store %arg7[%c0_9, %c126], %13 {strides = array<i32>} : memref<8x512xbf16, #tpu.memory_space<vmem>>, vector<8x2xbf16>,
    %cst_10 = arith.constant 0.000000e+00 : bf16
    %15 = vector.broadcast %cst_10 : bf16 to vector<8x2xbf16>
    %c0_11 = arith.constant 0 : index
    %c384 = arith.constant 384 : index
    %16 = vector.load %arg7[%c0_11, %c384] : memref<8x512xbf16, #tpu.memory_space<vmem>>, vector<8x2xbf16>
    tpu.vector_store %arg7[%c0_11, %c384], %15 {strides = array<i32>} : memref<8x512xbf16, #tpu.memory_space<vmem>>, vector<8x2xbf16>,
    %c0_12 = arith.constant 0 : index
    %c0_13 = arith.constant 0 : index
    %17 = vector.load %arg4[%c0_12, %c0_13] : memref<16x40xbf16, #tpu.memory_space<vmem>>, vector<16x8xbf16>
    %c0_14 = arith.constant 0 : index
    %c126_15 = arith.constant 126 : index
    %18 = vector.load %arg7[%c0_14, %c126_15] : memref<8x512xbf16, #tpu.memory_space<vmem>>, vector<8x256xbf16>
    %cst_16 = arith.constant dense<0.000000e+00> : vector<16x256xf32>
    %19 = tpu.matmul %17, %18, %cst_16 {dimension_numbers = #tpu.dot_dimension_numbers<[1], [0], [0], [1], [0, 0, 1, 1], [], []>} : vector<16x8xbf16>, vector<8x256xbf16>, vector<16x256xf32> -> vector<16x256xf32>
    %c0_17 = arith.constant 0 : index
    %c8 = arith.constant 8 : index
    %20 = vector.load %arg4[%c0_17, %c8] : memref<16x40xbf16, #tpu.memory_space<vmem>>, vector<16x8xbf16>
    %c0_18 = arith.constant 0 : index
    %c127 = arith.constant 127 : index
    %21 = vector.load %arg7[%c0_18, %c127] : memref<8x512xbf16, #tpu.memory_space<vmem>>, vector<8x256xbf16>
    %cst_19 = arith.constant dense<0.000000e+00> : vector<16x256xf32>
    %22 = tpu.matmul %20, %21, %cst_19 {dimension_numbers = #tpu.dot_dimension_numbers<[1], [0], [0], [1], [0, 0, 1, 1], [], []>} : vector<16x8xbf16>, vector<8x256xbf16>, vector<16x256xf32> -> vector<16x256xf32>
    %23 = arith.addf %19, %22 : vector<16x256xf32>
    %c0_20 = arith.constant 0 : index
    %c16 = arith.constant 16 : index
    %24 = vector.load %arg4[%c0_20, %c16] : memref<16x40xbf16, #tpu.memory_space<vmem>>, vector<16x8xbf16>
    %c0_21 = arith.constant 0 : index
    %c128_22 = arith.constant 128 : index
    %25 = vector.load %arg7[%c0_21, %c128_22] : memref<8x512xbf16, #tpu.memory_space<vmem>>, vector<8x256xbf16>
    %cst_23 = arith.constant dense<0.000000e+00> : vector<16x256xf32>
    %26 = tpu.matmul %24, %25, %cst_23 {dimension_numbers = #tpu.dot_dimension_numbers<[1], [0], [0], [1], [0, 0, 1, 1], [], []>} : vector<16x8xbf16>, vector<8x256xbf16>, vector<16x256xf32> -> vector<16x256xf32>
    %27 = arith.addf %23, %26 : vector<16x256xf32>
    %c0_24 = arith.constant 0 : index
    %c24 = arith.constant 24 : index
    %28 = vector.load %arg4[%c0_24, %c24] : memref<16x40xbf16, #tpu.memory_space<vmem>>, vector<16x8xbf16>
    %c0_25 = arith.constant 0 : index
    %c129 = arith.constant 129 : index
    %29 = vector.load %arg7[%c0_25, %c129] : memref<8x512xbf16, #tpu.memory_space<vmem>>, vector<8x256xbf16>
    %cst_26 = arith.constant dense<0.000000e+00> : vector<16x256xf32>
    %30 = tpu.matmul %28, %29, %cst_26 {dimension_numbers = #tpu.dot_dimension_numbers<[1], [0], [0], [1], [0, 0, 1, 1], [], []>} : vector<16x8xbf16>, vector<8x256xbf16>, vector<16x256xf32> -> vector<16x256xf32>
    %31 = arith.addf %27, %30 : vector<16x256xf32>
    %c0_27 = arith.constant 0 : index
    %c32 = arith.constant 32 : index
    %32 = vector.load %arg4[%c0_27, %c32] : memref<16x40xbf16, #tpu.memory_space<vmem>>, vector<16x8xbf16>
    %c0_28 = arith.constant 0 : index
    %c130 = arith.constant 130 : index
    %33 = vector.load %arg7[%c0_28, %c130] : memref<8x512xbf16, #tpu.memory_space<vmem>>, vector<8x256xbf16>
    %cst_29 = arith.constant dense<0.000000e+00> : vector<16x256xf32>
    %34 = tpu.matmul %32, %33, %cst_29 {dimension_numbers = #tpu.dot_dimension_numbers<[1], [0], [0], [1], [0, 0, 1, 1], [], []>} : vector<16x8xbf16>, vector<8x256xbf16>, vector<16x256xf32> -> vector<16x256xf32>
    %35 = arith.addf %31, %34 : vector<16x256xf32>
    %c0_30 = arith.constant 0 : index
    %c0_31 = arith.constant 0 : index
    %36 = vector.load %arg5[%c0_30, %c0_31] : memref<16x1xf32, #tpu.memory_space<vmem>>, vector<16x1xf32>
    %37 = vector.broadcast %36 : vector<16x1xf32> to vector<16x256xf32>
    %38 = arith.addf %35, %37 : vector<16x256xf32>
    %cst_32 = arith.constant 0.00999999977 : f32
    %39 = vector.broadcast %cst_32 : f32 to vector<16x256xf32>
    %40 = arith.mulf %39, %38 : vector<16x256xf32>
    %41 = arith.maximumf %38, %40 : vector<16x256xf32>
    %42 = arith.addf %41, %1 : vector<16x256xf32>
    %c0_33 = arith.constant 0 : index
    %c0_34 = arith.constant 0 : index
    %c0_35 = arith.constant 0 : index
    %43 = vector.load %arg6[%c0_33, %c0_34, %c0_35] : memref<1x16x256xf32, #tpu.memory_space<vmem>>, vector<1x16x256xf32>
    %44 = vector.shape_cast %43 : vector<1x16x256xf32> to vector<16x256xf32>
    %45 = vector.shape_cast %42 : vector<16x256xf32> to vector<1x16x256xf32>
    tpu.vector_store %arg6[%c0_33, %c0_34, %c0_35], %45 {strides = array<i32>} : memref<1x16x256xf32, #tpu.memory_space<vmem>>, vector<1x16x256xf32>,
    return
  }
  func.func @transform_0(%arg0: i32) -> (i32, i32, i32) {
    %c0_i32 = arith.constant 0 : i32
    %c0_i32_0 = arith.constant 0 : i32
    %c0_i32_1 = arith.constant 0 : i32
    return %arg0, %c0_i32, %c0_i32_0 : i32, i32, i32
  }
  func.func @transform_1(%arg0: i32) -> (i32, i32) {
    %c0_i32 = arith.constant 0 : i32
    %c0_i32_0 = arith.constant 0 : i32
    %c0_i32_1 = arith.constant 0 : i32
    return %c0_i32, %c0_i32_0 : i32, i32
  }
  func.func @transform_2(%arg0: i32) -> (i32, i32) {
    %c0_i32 = arith.constant 0 : i32
    %c0_i32_0 = arith.constant 0 : i32
    %c0_i32_1 = arith.constant 0 : i32
    return %c0_i32, %c0_i32_0 : i32, i32
  }
  func.func @transform_3(%arg0: i32) -> (i32, i32) {
    %c0_i32 = arith.constant 0 : i32
    %c0_i32_0 = arith.constant 0 : i32
    %c0_i32_1 = arith.constant 0 : i32
    return %c0_i32, %c0_i32_0 : i32, i32
  }
  func.func @transform_4(%arg0: i32) -> (i32, i32) {
    %c0_i32 = arith.constant 0 : i32
    %c0_i32_0 = arith.constant 0 : i32
    %c0_i32_1 = arith.constant 0 : i32
    return %c0_i32, %c0_i32_0 : i32, i32
  }
  func.func @transform_5(%arg0: i32) -> (i32, i32, i32) {
    %c0_i32 = arith.constant 0 : i32
    %c0_i32_0 = arith.constant 0 : i32
    %c0_i32_1 = arith.constant 0 : i32
    return %arg0, %c0_i32, %c0_i32_0 : i32, i32, i32
  }
}

</mosaic_0001>

<bundles_post_ra>
// kernel: tpu_custom_call.1
= control target key start
LH: loop header
LB: loop body
LE: loop exit
PB: predicated region body
PF: predicated region fallthrough
CT: control target
= control target key end

     0   :  { %10 = vsyncpa [#allocation4], 0  ;;  %s1255_s0 = inlined_call_operand.hbm [shape: f32[2,16,256], index: 0, kind: input, shape index: {}]   ;;  %s1256_s1 = inlined_call_operand.vmem [shape: bf16[8,16], index: 1, kind: input, shape index: {}]   ;;  %s1257_s2 = inlined_call_operand.vmem [shape: f32[8,1], index: 2, kind: input, shape index: {}]   ;;  %s1258_s3 = inlined_call_operand.vmem [shape: bf16[16,40], index: 3, kind: input, shape index: {}]   ;;  %s1259_s4 = inlined_call_operand.vmem [shape: f32[16,1], index: 4, kind: input, shape index: {}]   ;;  %s1260_s5 = inlined_call_operand.hbm [shape: f32[2,16,256], index: 5, kind: output, shape index: {}]  }
   0x1   :  { %12 = vsyncpa [#allocation4 + $0x1], 0 }
   0x2   :  { %13 = vsyncpa [#allocation5], 0 }
   0x3   :  { %15 = vsyncpa [#allocation5 + $0x1], 0  ;;  %s1034_s18 = smov 0   ;;  %s1036_s19 = smov 0  }
   0x4   :  { %s1038_s20 = smov 0   ;;  %s1040_s21 = smov 0  }
   0x5 LB: > { %s1055_s22 = sadd.s32 4294967295, %s987_s21   ;;  %s789_s23 = sadd.s32 4294967294, %s987_s21   ;;  %s987_s21 = sphi %s1040_s21, %s1275_s21   ;;  %s983_s20 = sphi %s1038_s20, %s1274_s20   ;;  %s979_s19 = sphi %s1036_s19, %s1273_s19   ;;  %s975_s18 = sphi %s1034_s18, %s1272_s18  }
   0x6   : > { %s1059_s24 = sadd.s32 1, %s987_s21   ;;  %s28_s25 = sadd.s32 1, %s983_s20 }
   0x7   : > { %s25_s26 = ssub.s32 %s987_s21, %s1059_s24  ;;  %p35_p0 = scmp.ne.s32.totalorder %s983_s20, %s979_s19 }
   0x8   : > { %p26_p1 = scmp.eq.s32.totalorder %s25_s26, 0  ;;  %p36_p2 = scmp.eq.s32.totalorder %s987_s21, 0 }
   0x9   : > { %p41_p3 = scmp.ne.s32.totalorder %s979_s19, %s975_s18  ;;  %p42_p4 = scmp.eq.s32.totalorder %s1055_s22, 0 }
   0xa   : > { %s1071_s27 = scalar_select %p26_p1, %s983_s20, %s28_s25  }
   0xb   : > { %p1073_p5 = por %p36_p2, %p35_p0  ;;  %p1077_p6 = por %p42_p4, %p41_p3 }
   0xc   : > { %p149_p7 = scmp.eq.s32.totalorder %s1055_s22, 1  ;;  %p155_p8 = scmp.eq.s32.totalorder %s789_s23, 1 }
   0xd   : > { %s1264_s29 = scalar_select %p1077_p6, 1, 0 }
   0xe   : > { %p839_p10 = scmp.lt.s32.totalorder %s987_s21, 2  ;;  %p1084_p11 = por %p149_p7, %p35_p0 }
   0xf   : > { %p1088_p12 = por %p155_p8, %p41_p3  ;;  %s187_s7 = sand.u32 1, %s983_s20  }
  0x10   : > { %s1265_s30 = scalar_select %p1084_p11, 1, 0 }
  0x11   : > { %s1266_s6 = scalar_select %p1088_p12, 1, 0 }
  0x12   : > { %s824_s8 = sshll.u32 %s987_s21, 9  ;;  %s792_s9 = sshll.u32 %s187_s7, 5 }
  0x13   : > { %s1097_s12 = scalar_lea.hbm %s1255_s0, %s824_s8  ;;  %s191_s13 = scalar_lea.vmem [#allocation3], %s792_s9 }
  0x14   : > { %s198_s14 = sshll.u32 %s191_s13, 4  ;;  %p1101_p13 = pnand %p839_p10, %p1073_p5  ;;  %s1105_s14 = int_to_ptr.vmem [resolvable:$true] %s198_s14 }
  0x15   : > { %s1107_s16 = scalar_lea.sflag [#allocation4], %s187_s7  ;;  %s895_s17 = scalar_lea.hbm %s1097_s12, 512 }
  0x16   : > { %p896_p0 = scmp.ne.s32.totalorder %s1097_s12, %s895_s17  ;;  %p897_p1 = pneg %p1101_p13 }
  0x17   : > { %s900_s26 = scalar_lea.hbm %s1255_s0, 1024  ;;  %p901_p4 = scmp.lt.s32.totalorder %s1097_s12, %s1255_s0 }
  0x18   : > { %p898_p2 = pnand %p897_p1, %p896_p0  ;;  %p902_p5 = scmp.lt.s32.totalorder %s900_s26, %s895_s17 }
  0x1a   : > { %p899_p3 = pneg %p898_p2  ;;  %p903_p7 = por %p902_p5, %p901_p4 }
  0x1c   : > { %p904_p8 = pnand %p903_p7, %p899_p3 }
  0x1e   : > { %907 = shalt.err (!%p904_p8)
}
  0x1f   : > { %s908_s7 = scalar_lea.vmem %s1105_s14, 512  ;;  %s989_s9 = smov [#allocation3]  }
  0x20   : > { %p909_p10 = scmp.ne.s32.totalorder %s1105_s14, %s908_s7  ;;  %s913_s10 = sshll.u32 %s989_s9, 4  ;;  %s914_s10 = int_to_ptr.vmem [resolvable:$false] %s913_s10 }
  0x21   : > { %s915_s11 = scalar_lea.vmem %s914_s10, 1024  ;;  %p916_p2 = scmp.lt.s32.totalorder %s1105_s14, %s914_s10 }
  0x22   : > { %p911_p9 = pnand %p909_p10, %p897_p1  ;;  %p917_p12 = scmp.lt.s32.totalorder %s915_s11, %s908_s7 }
  0x24   : > { %p912_p0 = pneg %p911_p9  ;;  %p918_p11 = por %p917_p12, %p916_p2 }
  0x26   : > { %p919_p6 = pnand %p918_p11, %p912_p0 }
  0x28   : > { %922 = shalt.err (!%p919_p6)
}
  0x29   : > { %s990_s13 = smov 256   ;;  %s991_s17 = smov 16  }
  0x2a   : > { %834 = dma.hbm_to_vmem [thread:$0]  (!%p1101_p13), %s1097_s12, 512, %s1105_s14, %s1107_s16, %s990_s13, %s990_s13, %s991_s17  }
  0x2b   : > { %p795_p9 = scmp.ge.s32.totalorder %s987_s21, 1  ;;  %p206_p1 = scmp.lt.s32.totalorder %s987_s21, 3 }
  0x2d   : > { %p207_p3 = pnand %p795_p9, %p206_p1 }
  0x2e   : > { %s1131_s23 = sand.u32 (!%p207_p3), 1, %s979_s19   ;;  %p1268_p6 = scmp.ne.s32.totalorder (!%p207_p3), %s1264_s29, 0 }
  0x2f   : > { %210 = sbr.rel (%p207_p3) target bundleno = 641 (0x281), region = 40  ;;  %s796_s25 = sshll.u32 (!%p207_p3), %s1131_s23, 5 }
  0x30   : > { %s213_s26 = scalar_lea.sflag (!%p207_p3), [#allocation4], %s1131_s23  ;;  %s216_s28 = scalar_lea.vmem (!%p207_p3), [#allocation3], %s796_s25 }
  0x34   : > { %966 = dma.done.wait (%p1268_p6), %s213_s26, 512  }
  0x35   : > { %968 = vsyncadd (%p1268_p6), %s213_s26, 4294966784  ;;  %v992_v0 = vmov 0   ;;  %v1145_v1 = vld [vmem:[%s216_s28 + $0x8] sm:$0xff]  ;;  %v1147_v2 = vld [vmem:[%s216_s28 + $0x18] sm:$0xff]  ;;  %vm257_vm0 = vcmask 130048   ;;  %vm315_vm1 = vcmask 1044464  }
  0x36   : > { %293 = vmatprep.mubr.bf16.mxu0 %v992_v0  ;;  %886 = vset.pattern.permute.xlu0 %v992_v0  ;;  %v1149_v3 = vld [vmem:[%s216_s28] sm:$0xff]  ;;  %v251_v4 = vpack.c.bf16 %v1147_v2, %v1145_v1  ;;  %v1153_v5 = vld [vmem:[%s216_s28 + $0x10] sm:$0xff]  ;;  %316 = vst.msk [vmem:[#allocation2] sm:$0xf] %vm315_vm1, %v992_v0  ;;  %s993_s7 = smov 120   ;;  %s994_s9 = smov 112  }
  0x37   : > { %390 = vmatprep.mubr.bf16.mxu1 %v992_v0  ;;  %887 = vset.pattern.permute.xlu1 %v992_v0  ;;  %v249_v6 = vld [vmem:[%s1257_s2] sm:$0xff]  ;;  %v250_v7 = vpack.c.bf16 %v1153_v5, %v1149_v3  ;;  %vm317_vm2 = vcmask 11264   ;;  %s995_s10 = smov 1   ;;  %s996_s11 = smov 2   ;;  %v671_v29 = vld [vmem:[%s1259_s4 + $0x8] sm:$0xff]  ;;  %vm344_vm3 = vcmask 7168  }
  0x38   : > { %254 = vperm.xlu0 %886, %v249_v6   ;;  %275 = vmatprep.subr.bf16.mxu0 %v251_v4  ;;  %v248_v8 = vld [vmem:[%s1256_s1] sm:$0xf]  ;;  %318 = vst.msk [vmem:[#allocation2 + $0xc] sm:$0xf] %vm317_vm2, %v992_v0  ;;  %s997_s13 = smov 127   ;;  %s998_s17 = smov 126  }
  0x39   : > { %276 = vmatpush1.bf16.msra.mxu0 %v250_v7  ;;  %v1167_v9 = vld [vmem:[%s1258_s3] sm:$0xff]   ;;  %s999_s26 = smov 96   ;;  %s1000_s12 = smov 104   ;;  %vm351_vm4 = vcmask 1043456   ;;  %vm347_vm5 = vcmask 64512   ;;  %vm407_vm6 = vcmask 15360  }
  0x3a   : > { %v670_v30 = vld [vmem:[%s1259_s4] sm:$0xff]  ;;  %vm544_vm7 = vcmask 1039360   ;;  %vm611_vm8 = vcmask 1031168   ;;  %s242_s16 = scalar_lea.vmem [#allocation6], %s796_s25  ;;  %p1269_p12 = scmp.ne.s32.totalorder %s1265_s30, 0 }
  0x3b   : > { %s716_s8 = sshll.u32 %s242_s16, 4  ;;  %s1205_s8 = int_to_ptr.vmem [resolvable:$true] %s716_s8 }
  0x3c   : > { %798 = vmatmul.mubr.msk.bf16.vlgmr.msra.gmra.mxu0 %vm257_vm0, %v248_v8  ;;  %328 = vrot.lane.b32.xlu0 %v1167_v9, %s993_s7  ;;  %s826_s7 = sshll.u32 %s1055_s22, 9  ;;  %s923_s22 = scalar_lea.vmem %s1205_s8, 512 }
  0x3d   : > { %451 = vmatprep.mubr.bf16.mxu0 %v992_v0  ;;  %s1211_s25 = scalar_lea.hbm %s1260_s5, %s826_s7  ;;  %p924_p11 = scmp.ne.s32.totalorder %s1205_s8, %s923_s22 }
  0x3f   : > { %v892_v28 = vld [vmem:[#allocation2 + $0xc] ss:$0 sps:$4 sm:$0xff]   ;;  %p925_p13 = pnand %p924_p11, %p1269_p12 }
  0x40   : > { %463 = vrot.lane.b32.xlu0 %v1167_v9, %s994_s9 }
  0x41   : > { %p926_p4 = pneg %p925_p13 }
  0xb3   : > { %v255_v10 = vpop.permute.xlu0 %254 }
  0xb7   : > { %v329_v31 = vpop.permute.xlu0 %328 }
  0xbb   : > { %v464_v32 = vpop.permute.xlu0 %463 }
  0xfc   : > { %v295_v11 = vpop.f32.mrf.mxu0 }
  0xfd   : > { %v296_v12 = vadd.f32 %v295_v11, %v255_v10 }
  0xfe   : > { %v297_v13 = vpop.f32.mrf.mxu0 }
  0xff   : > { %v302_v14 = vmul.f32 0.01, %v296_v12  ;;  %v298_v15 = vadd.f32 %v297_v13, %v255_v10 }
 0x100   : > { %v299_v16 = vpop.f32.mrf.mxu0 }
 0x101   : > { %v303_v17 = vmul.f32 0.01, %v298_v15  ;;  %v304_v19 = vmax.f32 %v296_v12, %v302_v14 }
 0x102   : > { %v300_v18 = vpop.f32.mrf.mxu0 }
 0x103   : > { %v305_v20 = vmax.f32 %v298_v15, %v303_v17  ;;  %v894_v27 = vpack.c.bf16 %v304_v19, %v304_v19 }
 0x105   : > { %v825_v21 = vpack.c.bf16 %v305_v20, %v304_v19  ;;  %v893_v26 = vpack.c.bf16 %v305_v20, %v305_v20  ;;  %v474_v41 = vsel %vm351_vm4, %v894_v27, 0 }
 0x107   : > { %314 = vst [vmem:[#allocation2 + $0x4] sm:$0xff] %v825_v21 }
 0x10e   : > { %v321_v22 = vld [vmem:[#allocation2] sm:$0xff]  ;;  %v891_v25 = vld [vmem:[#allocation2 + $0x8] ss:$0 sps:$4 sm:$0xff]  }
 0x10f   : > { %v802_v23 = vcombine.high %v321_v22, %v321_v22  ;;  %v801_v24 = vcombine.low %v321_v22, %v321_v22 }
 0x111   : > { %340 = vrot.lane.b32.xlu1 %v802_v23, %s995_s10  ;;  %338 = vrot.lane.b32.xlu0 %v801_v24, %s995_s10 }
 0x115   : > { %342 = vrot.lane.b32.xlu1 %v891_v25, %s995_s10  ;;  %403 = vrot.lane.b32.xlu0 %v802_v23, %s996_s11 }
 0x119   : > { %401 = vrot.lane.b32.xlu1 %v801_v24, %s996_s11  ;;  %540 = vrot.lane.b32.xlu0 %v893_v26, %s997_s13 }
 0x11d   : > { %405 = vrot.lane.b32.xlu1 %v891_v25, %s996_s11  ;;  %605 = vrot.lane.b32.xlu0 %v894_v27, %s998_s17  ;;  %s703_s11 = scalar_lea.sflag [#allocation5], %s1131_s23 }
 0x121   : > { %542 = vrot.lane.b32.xlu1 %v892_v28, %s997_s13  ;;  %609 = vrot.lane.b32.xlu0 %v892_v28, %s998_s17 }
 0x125   : > { %538 = vrot.lane.b32.xlu1 %v894_v27, %s997_s13  ;;  %603 = vrot.lane.b32.xlu0 %v1167_v9, %s999_s26  ;;  %s1001_s13 = smov [#allocation6]  }
 0x129   : > { %607 = vrot.lane.b32.xlu1 %v893_v26, %s998_s17  ;;  %679 = vperm.xlu0 %886, %v671_v29   ;;  %s927_s17 = sshll.u32 %s1001_s13, 4  ;;  %s928_s17 = int_to_ptr.vmem [resolvable:$false] %s927_s17 }
 0x12a   : > { %s929_s26 = scalar_lea.vmem %s928_s17, 1024  ;;  %p930_p5 = scmp.lt.s32.totalorder %s1205_s8, %s928_s17 }
 0x12b   : > { %p931_p7 = scmp.lt.s32.totalorder %s929_s26, %s923_s22 }
 0x12d   : > { %528 = vrot.lane.b32.xlu1 %v1167_v9, %s1000_s12  ;;  %p932_p8 = por %p931_p7, %p930_p5 }
 0x12f   : > { %p933_p10 = pnand %p932_p8, %p926_p4 }
 0x131   : > { %674 = vperm.xlu1 %887, %v670_v30  }
 0x183   : > { %v341_v33 = vpop.permute.xlu1 %340  ;;  %v339_v34 = vpop.permute.xlu0 %338 }
 0x184   : > { %v345_v35 = vsel %vm344_vm3, %v339_v34, %v341_v33 }
 0x185   : > { %v353_v39 = vsel %vm351_vm4, %v345_v35, 0 }
 0x187   : > { %v343_v36 = vpop.permute.xlu1 %342  ;;  %v404_v37 = vpop.permute.xlu0 %403 }
 0x188   : > { %v346_v38 = vsel %vm344_vm3, %v341_v33, %v343_v36 }
 0x189   : > { %804 = vmatprep.subr.msk.bf16.mxu1 %vm351_vm4, %v346_v38 }
 0x18a   : > { %373 = vmatpush1.bf16.msra.mxu1 %v353_v39 }
 0x18b   : > { %v402_v40 = vpop.permute.xlu1 %401  ;;  %810 = vmatprep.subr.msk.bf16.mxu1 %vm351_vm4, %v893_v26  ;;  %v541_v43 = vpop.permute.xlu0 %540 }
 0x18c   : > { %v408_v42 = vsel %vm407_vm6, %v402_v40, %v404_v37 }
 0x18d   : > { %805 = vmatmul.mubr.msk.bf16.vlgmr.msra.gmra.mxu1 %vm347_vm5, %v329_v31  ;;  %v414_v46 = vsel %vm351_vm4, %v408_v42, 0 }
 0x18e   : > { %494 = vmatpush1.bf16.msra.mxu1 %v474_v41  ;;  %511 = vmatprep.mubr.bf16.mxu1 %v992_v0 }
 0x18f   : > { %v406_v44 = vpop.permute.xlu1 %405  ;;  %v606_v48 = vpop.permute.xlu0 %605 }
 0x190   : > { %v409_v45 = vsel %vm407_vm6, %v404_v37, %v406_v44 }
 0x191   : > { %806 = vmatprep.subr.msk.bf16.mxu0 %vm351_vm4, %v409_v45 }
 0x192   : > { %434 = vmatpush1.bf16.msra.mxu0 %v414_v46 }
 0x193   : > { %v543_v47 = vpop.permute.xlu1 %542  ;;  %v610_v52 = vpop.permute.xlu0 %609 }
 0x194   : > { %v546_v49 = vsel %vm544_vm7, %v541_v43, %v543_v47 }
 0x195   : > { %807 = vmatmul.mubr.msk.bf16.vlgmr.msra.gmra.mxu0 %vm347_vm5, %v1167_v9  ;;  %811 = vmatmul.mubr.msk.bf16.vlgmr.msra.gmra.mxu1 %vm347_vm5, %v464_v32 }
 0x196   : > { %815 = vmatprep.subr.msk.bf16.mxu0 %vm351_vm4, %v546_v49  ;;  %588 = vmatprep.mubr.bf16.mxu0 %v992_v0 }
 0x197   : > { %v539_v50 = vpop.permute.xlu1 %538  ;;  %655 = vmatprep.mubr.bf16.mxu1 %v992_v0  ;;  %v604_v58 = vpop.permute.xlu0 %603 }
 0x198   : > { %v545_v51 = vsel %vm544_vm7, %v539_v50, %v541_v43 }
 0x199   : > { %v551_v53 = vsel %vm351_vm4, %v545_v51, 0 }
 0x19a   : > { %571 = vmatpush1.bf16.msra.mxu0 %v551_v53 }
 0x19b   : > { %v608_v54 = vpop.permute.xlu1 %607 }
 0x19c   : > { %v612_v55 = vsel %vm611_vm8, %v606_v48, %v608_v54  ;;  %v613_v56 = vsel %vm611_vm8, %v608_v54, %v610_v52 }
 0x19d   : > { %v618_v57 = vsel %vm351_vm4, %v612_v55, 0  ;;  %817 = vmatprep.subr.msk.bf16.mxu1 %vm351_vm4, %v613_v56 }
 0x19e   : > { %638 = vmatpush1.bf16.msra.mxu1 %v618_v57 }
 0x19f   : > { %v529_v59 = vpop.permute.xlu1 %528 }
 0x1a0   : > { %816 = vmatmul.mubr.msk.bf16.vlgmr.msra.gmra.mxu0 %vm347_vm5, %v529_v59 }
 0x1a1   : > { %818 = vmatmul.mubr.msk.bf16.vlgmr.msra.gmra.mxu1 %vm347_vm5, %v604_v58 }
 0x1a4   : > { %v680_v39 = vpop.permute.xlu0 %679 }
 0x1ac   : > { %v675_v22 = vpop.permute.xlu1 %674 }
 0x24d   : > { %v392_v60 = vpop.f32.mrf.mxu1 }
 0x24f   : > { %v394_v61 = vpop.f32.mrf.mxu1 }
 0x251   : > { %v396_v62 = vpop.f32.mrf.mxu1 }
 0x253   : > { %v398_v63 = vpop.f32.mrf.mxu1 }
 0x255   : > { %v453_v0 = vpop.f32.mrf.mxu0  ;;  %v513_v4 = vpop.f32.mrf.mxu1 }
 0x256   : > { %v454_v9 = vadd.f32 %v453_v0, %v392_v60 }
 0x257   : > { %v455_v6 = vpop.f32.mrf.mxu0  ;;  %v515_v7 = vpop.f32.mrf.mxu1 }
 0x258   : > { %v456_v11 = vadd.f32 %v455_v6, %v394_v61  ;;  %v522_v13 = vadd.f32 %v513_v4, %v454_v9 }
 0x259   : > { %v457_v8 = vpop.f32.mrf.mxu0  ;;  %v517_v10 = vpop.f32.mrf.mxu1 }
 0x25a   : > { %v458_v14 = vadd.f32 %v457_v8, %v396_v62  ;;  %v523_v17 = vadd.f32 %v515_v7, %v456_v11 }
 0x25b   : > { %v459_v12 = vpop.f32.mrf.mxu0  ;;  %v519_v15 = vpop.f32.mrf.mxu1 }
 0x25c   : > { %v460_v18 = vadd.f32 %v459_v12, %v398_v63  ;;  %v524_v23 = vadd.f32 %v517_v10, %v458_v14 }
 0x25e   : > { %v525_v28 = vadd.f32 %v519_v15, %v460_v18 }
 0x260   : > { %v590_v16 = vpop.f32.mrf.mxu0 }
 0x261   : > { %v599_v19 = vadd.f32 %v590_v16, %v522_v13  ;;  %v657_v20 = vpop.f32.mrf.mxu1 }
 0x262   : > { %v592_v21 = vpop.f32.mrf.mxu0 }
 0x263   : > { %v666_v24 = vadd.f32 %v657_v20, %v599_v19  ;;  %v600_v25 = vadd.f32 %v592_v21, %v523_v17  ;;  %v659_v26 = vpop.f32.mrf.mxu1 }
 0x264   : > { %v594_v27 = vpop.f32.mrf.mxu0 }
 0x265   : > { %v667_v29 = vadd.f32 %v659_v26, %v600_v25  ;;  %v682_v30 = vadd.f32 %v675_v22, %v666_v24  ;;  %v601_v31 = vadd.f32 %v594_v27, %v524_v23  ;;  %v661_v32 = vpop.f32.mrf.mxu1 }
 0x266   : > { %v596_v33 = vpop.f32.mrf.mxu0 }
 0x267   : > { %v683_v34 = vadd.f32 %v675_v22, %v667_v29  ;;  %v686_v35 = vmul.f32 0.01, %v682_v30  ;;  %v668_v36 = vadd.f32 %v661_v32, %v601_v31  ;;  %v602_v37 = vadd.f32 %v596_v33, %v525_v28  ;;  %v663_v38 = vpop.f32.mrf.mxu1 }
 0x269   : > { %v687_v40 = vmul.f32 0.01, %v683_v34  ;;  %v690_v41 = vmax.f32 %v682_v30, %v686_v35  ;;  %v684_v42 = vadd.f32 %v680_v39, %v668_v36  ;;  %v669_v43 = vadd.f32 %v663_v38, %v602_v37 }
 0x26b   : > { %v691_v44 = vmax.f32 %v683_v34, %v687_v40  ;;  %v694_v45 = vadd.f32 %v690_v41, %v1149_v3  ;;  %v688_v46 = vmul.f32 0.01, %v684_v42  ;;  %v685_v47 = vadd.f32 %v680_v39, %v669_v43 }
 0x26d   : > { %v695_v48 = vadd.f32 %v691_v44, %v1145_v1  ;;  %698 = vst [vmem:[%s242_s16] sm:$0xff] %v694_v45  ;;  %v692_v49 = vmax.f32 %v684_v42, %v688_v46  ;;  %v689_v50 = vmul.f32 0.01, %v685_v47 }
 0x26f   : > { %699 = vst [vmem:[%s242_s16 + $0x8] sm:$0xff] %v695_v48  ;;  %v696_v3 = vadd.f32 %v692_v49, %v1153_v5  ;;  %v693_v51 = vmax.f32 %v685_v47, %v689_v50 }
 0x271   : > { %700 = vst [vmem:[%s242_s16 + $0x10] sm:$0xff] %v696_v3  ;;  %v697_v1 = vadd.f32 %v693_v51, %v1147_v2 }
 0x273   : > { %701 = vst [vmem:[%s242_s16 + $0x18] sm:$0xff] %v697_v1 }
 0x274   : > { %936 = shalt.err (!%p933_p10)
}
 0x275   : > { %s937_s28 = scalar_lea.hbm %s1211_s25, 512  ;;  %s941_s14 = scalar_lea.hbm %s1260_s5, 1024 }
 0x276   : > { %p938_p0 = scmp.ne.s32.totalorder %s1211_s25, %s937_s28  ;;  %p942_p1 = scmp.lt.s32.totalorder %s1211_s25, %s1260_s5 }
 0x277   : > { %p943_p3 = scmp.lt.s32.totalorder %s941_s14, %s937_s28 }
 0x278   : > { %p939_p2 = pnand %p938_p0, %p1269_p12 }
 0x279   : > { %p944_p6 = por %p943_p3, %p942_p1 }
 0x27a   : > { %p940_p9 = pneg %p939_p2 }
 0x27c   : > { %p945_p11 = pnand %p944_p6, %p940_p9 }
 0x27e   : > { %948 = shalt.err (!%p945_p11)
}
 0x27f   : > { %s1002_s7 = smov 256   ;;  %s1003_s9 = smov 16  }
 0x280   : > { %829 = dma.vmem_to_hbm [thread:$0]  (%p1269_p12), %s1205_s8, 512, %s1211_s25, %s703_s11, %s1002_s7, %s1002_s7, %s1003_s9  }
 0x281 PF: > { %s731_s10 = sand.u32 1, %s975_s18   ;;  %p1270_p13 = scmp.ne.s32.totalorder %s1266_s6, 0 }
 0x282   : > { %p1271_p4 = scmp.ge.s32.totalorder %s987_s21, 2  ;;  %s732_s22 = scalar_lea.sflag [#allocation5], %s731_s10 }
 0x284   : > { %p836_p5 = pnand %p1271_p4, %p1270_p13 }
 0x286   : > { %p837_p7 = pneg %p836_p5 }
 0x288   : > { %970 = dma.done.wait (%p837_p7), %s732_s22, 512  }
 0x289   : > { %972 = vsyncadd (%p837_p7), %s732_s22, 4294966784  ;;  %p18_p8 = scmp.ge.s32.totalorder %s1059_s24, 4   ;;  %s1272_s18 = smov %s979_s19 }
 0x28a   : > { %s1273_s19 = smov %s983_s20  ;;  %s1274_s20 = smov %s1071_s27 }
 0x28b   : > { %s1275_s21 = smov %s1059_s24  ;;  %20 = sbr.rel (!%p18_p8) target bundleno = 5 (0x5), region = 85 }
 0x290   :  { %737 = vsyncpa [#allocation4], 1 }
 0x291   :  { %739 = vsyncpa [#allocation4 + $0x1], 1 }
 0x292   :  { %740 = vsyncpa [#allocation5], 1 }
 0x293   :  { %742 = vsyncpa [#allocation5 + $0x1], 1 }

</bundles_post_ra>
